<compile_context>
chip_gen: v5e
topology: v5e:2x2
jax: 0.10.0
libtpu: 0.0.40
codegen_flags: <defaults>
</compile_context>

<pallas_src>
import functools

import jax
import jax.numpy as jnp
from jax import lax
from jax.experimental import pallas as pl
from jax.experimental.pallas import tpu as pltpu

KERNEL_SIZE = 7
PAD = KERNEL_SIZE // 2


def spatial_attention_kernel(x_ref, m_avg_ref, m_max_ref, o_ref):
    """One grid step == nb batch elements.

    x_ref:     VMEM (nb, C, HWp) f32   -- lane-dense activations
    m_avg_ref: VMEM (HWp, HWp)  bf16   -- conv operator (mean channel), resident
    m_max_ref: VMEM (HWp, HWp)  bf16   -- conv operator (max channel), resident
    o_ref:     VMEM (nb, C, HWp)
    """
    x = x_ref[...]                                      # (nb, C, HWp)
    avg = jnp.mean(x, axis=1)                           # (nb, HWp) channel mean
    mx = jnp.max(x, axis=1)                             # (nb, HWp) channel max
    # Full 7x7 "same" conv for the whole block as two batched MXU matmuls
    # (bf16 operands, f32 accumulation).
    logits = (
        jnp.dot(avg.astype(jnp.bfloat16), m_avg_ref[...],
                preferred_element_type=jnp.float32)
        + jnp.dot(mx.astype(jnp.bfloat16), m_max_ref[...],
                  preferred_element_type=jnp.float32))  # (nb, HWp)
    # Keep the elementwise path in f32 (v5e has no bf16 VPU/EUP).
    att = jax.nn.sigmoid(logits)                        # (nb, HWp)
    # Re-read x from VMEM for the store; broadcast the gate over channels.
    o_ref[...] = (x_ref[...] * att[:, None, :]).astype(o_ref.dtype)


def _round_up(n, m):
    return ((n + m - 1) // m) * m


def _conv_operators(w, H, W, HWp, dtype=jnp.bfloat16):
    """Two dense (HWp, HWp) matrices implementing the zero-padded KxK conv over
    the (mean, max) map:  conv_flat = avg_flat @ M_avg + max_flat @ M_max.

    M_c = sum_kh kron(ST_kh, B_{c,kh}) with
      ST_kh[p, i]   = 1 iff source row p == output row i + (kh - PAD)
      B_{c,kh}[q,j] = w[0, c, kh, q - j + PAD]   (0 outside the band)
    Rows/cols beyond H*W are zero-padded (padded lanes contribute nothing).
    """
    K = w.shape[-1]
    P = K // 2
    HW = H * W
    rh = jnp.arange(H)
    q = jnp.arange(W)[:, None]          # source column
    j = jnp.arange(W)[None, :]          # output column
    mats = []
    for c in range(2):                  # c=0: mean map, c=1: max map
        m_c = jnp.zeros((HW, HW), jnp.float32)
        for kh in range(K):
            dh = kh - P
            st = (rh[:, None] == (rh[None, :] + dh)).astype(jnp.float32)  # (H,H)
            band = jnp.zeros((W, W), jnp.float32)
            for kw in range(K):
                band = band + w[0, c, kh, kw] * ((q - j) == (kw - P)).astype(jnp.float32)
            m_c = m_c + jnp.kron(st, band)
        if HWp != HW:
            m_c = jnp.pad(m_c, ((0, HWp - HW), (0, HWp - HW)))
        mats.append(m_c.astype(dtype))
    return mats[0], mats[1]


def _pick_nb(N, C, HWp, m_half_bytes, vmem_budget=28 << 20, cap=64):
    """Largest divisor of N that fits the VMEM budget, amortizes per-step
    overhead, and keeps >= 2 grid steps (v7x has 2 TensorCores)."""
    act_bytes = C * HWp * 4                       # one batch element, f32
    # Worst case: both operator halves double-buffered.
    avail = max(vmem_budget - 4 * m_half_bytes, act_bytes)
    # 2 input + 2 output pipeline buffers of the activation block.
    max_nb_vmem = max(1, avail // (4 * act_bytes))
    nb_cap = min(cap, max_nb_vmem)
    if N >= 2:
        nb_cap = max(1, min(nb_cap, N // 2))      # grid >= 2 for megacore sharding
    nb = 1
    for d in range(1, N + 1):
        if N % d == 0 and d <= nb_cap:
            nb = d
    return nb


@functools.partial(jax.jit, static_argnames=("nb", "single_buffer_m"))
def _spatial_attention(x, w, nb, single_buffer_m):
    N, C, H, W = x.shape
    HW = H * W
    HWp = _round_up(HW, 128)                       # lane-dense last dim
    m_avg, m_max = _conv_operators(w, H, W, HWp)   # batch-invariant, bf16
    x_flat = x.reshape(N, C, HW)                   # free row-major reshape
    if HWp != HW:
        x_flat = jnp.pad(x_flat, ((0, 0), (0, 0), (0, HWp - HW)))

    m_spec_kwargs = {}
    if single_buffer_m:
        # Resident operand: one buffer is enough (constant index_map).
        m_spec_kwargs["pipeline_mode"] = pl.Buffered(1)

    out_flat = pl.pallas_call(
        spatial_attention_kernel,
        out_shape=jax.ShapeDtypeStruct((N, C, HWp), x.dtype),
        grid=(N // nb,),
        in_specs=[
            pl.BlockSpec((nb, C, HWp), lambda n: (n, 0, 0)),
            pl.BlockSpec((HWp, HWp), lambda n: (0, 0), **m_spec_kwargs),
            pl.BlockSpec((HWp, HWp), lambda n: (0, 0), **m_spec_kwargs),
        ],
        out_specs=pl.BlockSpec((nb, C, HWp), lambda n: (n, 0, 0)),
        compiler_params=pltpu.CompilerParams(
            dimension_semantics=("parallel",),
            vmem_limit_bytes=32 * 1024 * 1024),
    )(x_flat, m_avg, m_max)

    if HWp != HW:
        out_flat = out_flat[..., :HW]
    return out_flat.reshape(N, C, H, W)


_SINGLE_BUFFER_M = None  # lazily resolved: does this Pallas accept pl.Buffered(1)?


def spatial_attention(x, w):
    """x: (N, C, H, W) f32; w: (1, 2, K, K) conv weight (PyTorch OIHW, no bias)."""
    global _SINGLE_BUFFER_M
    N, C, H, W = x.shape
    HWp = _round_up(H * W, 128)
    nb = _pick_nb(N, C, HWp, m_half_bytes=HWp * HWp * 2)
    if _SINGLE_BUFFER_M is None:
        try:
            out = jax.block_until_ready(
                _spatial_attention(x, w, nb=nb, single_buffer_m=True))
            _SINGLE_BUFFER_M = True
            return out
        except Exception:
            # Fall back to default double-buffering of the resident operator.
            _SINGLE_BUFFER_M = False
    return _spatial_attention(x, w, nb=nb, single_buffer_m=_SINGLE_BUFFER_M)


if __name__ == "__main__":
    key = jax.random.PRNGKey(0)
    kx, kw = jax.random.split(key)

    N, C, H, W = 2, 4, 16, 16
    x = jax.random.normal(kx, (N, C, H, W), dtype=jnp.float32)

    # Deterministic conv weight, PyTorch layout (out=1, in=2, kh, kw), no bias.
    fan_in = 2 * KERNEL_SIZE * KERNEL_SIZE
    bound = 1.0 / (fan_in ** 0.5)
    w = jax.random.uniform(kw, (1, 2, KERNEL_SIZE, KERNEL_SIZE),
                           minval=-bound, maxval=bound, dtype=jnp.float32)

    out = jax.block_until_ready(spatial_attention(x, w))

    # Pure-JAX reference for sanity checking.
    avg = jnp.mean(x, axis=1, keepdims=True)
    mx = jnp.max(x, axis=1, keepdims=True)
    feat = jnp.concatenate([avg, mx], axis=1)
    conv = lax.conv_general_dilated(
        feat, w, window_strides=(1, 1),
        padding=[(PAD, PAD), (PAD, PAD)],
        dimension_numbers=("NCHW", "OIHW", "NCHW"))
    ref = x * jax.nn.sigmoid(conv)

    assert out.shape == ref.shape and out.dtype == ref.dtype
    err = float(jnp.max(jnp.abs(out - ref)))
    # Tolerance loosened slightly for the bf16-operand MXU path (f32 accumulate).
    assert jnp.allclose(out, ref, atol=2.5e-2, rtol=2.5e-2), err
    print("KERNEL_OK")
</pallas_src>

<mosaic_0001>
module attributes {stable_mosaic.version = 11 : i64} {
  func.func @spatial_attention_kernel(%arg0: i32, %arg1: memref<1x4x256xf32, #tpu.memory_space<vmem>>, %arg2: memref<256x256xbf16, #tpu.memory_space<vmem>>, %arg3: memref<256x256xbf16, #tpu.memory_space<vmem>>, %arg4: memref<1x4x256xf32, #tpu.memory_space<vmem>>) attributes {dimension_semantics = [#tpu.dimension_semantics<parallel>], iteration_bounds = array<i64: 2>, scalar_prefetch = 0 : i64, scratch_operands = 0 : i64, tpu.core_type = #tpu.core_type<tc>, window_params = [{transform_indices = @transform_0, window_bounds = array<i64: 1, 4, 256>}, {pipeline_mode = #tpu.pipeline_mode<synchronous>, transform_indices = @transform_1, window_bounds = array<i64: 256, 256>}, {pipeline_mode = #tpu.pipeline_mode<synchronous>, transform_indices = @transform_2, window_bounds = array<i64: 256, 256>}, {transform_indices = @transform_3, window_bounds = array<i64: 1, 4, 256>}]} {
    %c0 = arith.constant 0 : index
    %c0_0 = arith.constant 0 : index
    %c0_1 = arith.constant 0 : index
    %0 = vector.load %arg1[%c0, %c0_0, %c0_1] : memref<1x4x256xf32, #tpu.memory_space<vmem>>, vector<1x4x256xf32>
    %cst = arith.constant dense<0.000000e+00> : vector<1x256xf32>
    %1 = vector.multi_reduction <add>, %0, %cst [1] : vector<1x4x256xf32> to vector<1x256xf32>
    %cst_2 = arith.constant 4.000000e+00 : f32
    %2 = vector.broadcast %cst_2 : f32 to vector<1x256xf32>
    %3 = arith.divf %1, %2 : vector<1x256xf32>
    %cst_3 = arith.constant dense<0xFF800000> : vector<1x256xf32>
    %4 = vector.multi_reduction <maximumf>, %0, %cst_3 [1] : vector<1x4x256xf32> to vector<1x256xf32>
    %5 = arith.truncf %3 : vector<1x256xf32> to vector<1x256xbf16>
    %c0_4 = arith.constant 0 : index
    %c0_5 = arith.constant 0 : index
    %6 = vector.load %arg2[%c0_4, %c0_5] : memref<256x256xbf16, #tpu.memory_space<vmem>>, vector<256x256xbf16>
    %cst_6 = arith.constant dense<0.000000e+00> : vector<1x256xf32>
    %7 = tpu.matmul %5, %6, %cst_6 {dimension_numbers = #tpu.dot_dimension_numbers<[1], [0], [0], [1], [0, 0, 1, 1], [], []>} : vector<1x256xbf16>, vector<256x256xbf16>, vector<1x256xf32> -> vector<1x256xf32>
    %8 = arith.truncf %4 : vector<1x256xf32> to vector<1x256xbf16>
    %c0_7 = arith.constant 0 : index
    %c0_8 = arith.constant 0 : index
    %9 = vector.load %arg3[%c0_7, %c0_8] : memref<256x256xbf16, #tpu.memory_space<vmem>>, vector<256x256xbf16>
    %cst_9 = arith.constant dense<0.000000e+00> : vector<1x256xf32>
    %10 = tpu.matmul %8, %9, %cst_9 {dimension_numbers = #tpu.dot_dimension_numbers<[1], [0], [0], [1], [0, 0, 1, 1], [], []>} : vector<1x256xbf16>, vector<256x256xbf16>, vector<1x256xf32> -> vector<1x256xf32>
    %11 = arith.addf %7, %10 : vector<1x256xf32>
    %12 = arith.negf %11 : vector<1x256xf32>
    %13 = math.exp %12 : vector<1x256xf32>
    %cst_10 = arith.constant 1.000000e+00 : f32
    %14 = vector.broadcast %cst_10 : f32 to vector<1x256xf32>
    %15 = arith.addf %14, %13 : vector<1x256xf32>
    %16 = arith.divf %14, %15 : vector<1x256xf32>
    %c0_11 = arith.constant 0 : index
    %c0_12 = arith.constant 0 : index
    %c0_13 = arith.constant 0 : index
    %17 = vector.load %arg1[%c0_11, %c0_12, %c0_13] : memref<1x4x256xf32, #tpu.memory_space<vmem>>, vector<1x4x256xf32>
    %18 = vector.shape_cast %16 : vector<1x256xf32> to vector<1x1x256xf32>
    %19 = vector.broadcast %18 : vector<1x1x256xf32> to vector<1x4x256xf32>
    %20 = arith.mulf %17, %19 : vector<1x4x256xf32>
    %c0_14 = arith.constant 0 : index
    %c0_15 = arith.constant 0 : index
    %c0_16 = arith.constant 0 : index
    %21 = vector.load %arg4[%c0_14, %c0_15, %c0_16] : memref<1x4x256xf32, #tpu.memory_space<vmem>>, vector<1x4x256xf32>
    tpu.vector_store %arg4[%c0_14, %c0_15, %c0_16], %20 {strides = array<i32>} : memref<1x4x256xf32, #tpu.memory_space<vmem>>, vector<1x4x256xf32>,
    return
  }
  func.func @transform_0(%arg0: i32) -> (i32, i32, i32) {
    %c0_i32 = arith.constant 0 : i32
    %c0_i32_0 = arith.constant 0 : i32
    %c0_i32_1 = arith.constant 0 : i32
    return %arg0, %c0_i32, %c0_i32_0 : i32, i32, i32
  }
  func.func @transform_1(%arg0: i32) -> (i32, i32) {
    %c0_i32 = arith.constant 0 : i32
    %c0_i32_0 = arith.constant 0 : i32
    %c0_i32_1 = arith.constant 0 : i32
    return %c0_i32, %c0_i32_0 : i32, i32
  }
  func.func @transform_2(%arg0: i32) -> (i32, i32) {
    %c0_i32 = arith.constant 0 : i32
    %c0_i32_0 = arith.constant 0 : i32
    %c0_i32_1 = arith.constant 0 : i32
    return %c0_i32, %c0_i32_0 : i32, i32
  }
  func.func @transform_3(%arg0: i32) -> (i32, i32, i32) {
    %c0_i32 = arith.constant 0 : i32
    %c0_i32_0 = arith.constant 0 : i32
    %c0_i32_1 = arith.constant 0 : i32
    return %arg0, %c0_i32, %c0_i32_0 : i32, i32, i32
  }
}

module attributes {stable_mosaic.version = 11 : i64} {
  func.func @spatial_attention_kernel(%arg0: i32, %arg1: memref<1x4x256xf32, #tpu.memory_space<vmem>>, %arg2: memref<256x256xbf16, #tpu.memory_space<vmem>>, %arg3: memref<256x256xbf16, #tpu.memory_space<vmem>>, %arg4: memref<1x4x256xf32, #tpu.memory_space<vmem>>) attributes {dimension_semantics = [#tpu.dimension_semantics<parallel>], iteration_bounds = array<i64: 2>, scalar_prefetch = 0 : i64, scratch_operands = 0 : i64, tpu.core_type = #tpu.core_type<tc>, window_params = [{transform_indices = @transform_0, window_bounds = array<i64: 1, 4, 256>}, {pipeline_mode = #tpu.pipeline_mode<synchronous>, transform_indices = @transform_1, window_bounds = array<i64: 256, 256>}, {pipeline_mode = #tpu.pipeline_mode<synchronous>, transform_indices = @transform_2, window_bounds = array<i64: 256, 256>}, {transform_indices = @transform_3, window_bounds = array<i64: 1, 4, 256>}]} {
    %c0 = arith.constant 0 : index
    %c0_0 = arith.constant 0 : index
    %c0_1 = arith.constant 0 : index
    %0 = vector.load %arg1[%c0, %c0_0, %c0_1] : memref<1x4x256xf32, #tpu.memory_space<vmem>>, vector<1x4x256xf32>
    %cst = arith.constant dense<0.000000e+00> : vector<1x256xf32>
    %1 = vector.multi_reduction <add>, %0, %cst [1] : vector<1x4x256xf32> to vector<1x256xf32>
    %cst_2 = arith.constant 4.000000e+00 : f32
    %2 = vector.broadcast %cst_2 : f32 to vector<1x256xf32>
    %3 = arith.divf %1, %2 : vector<1x256xf32>
    %cst_3 = arith.constant dense<0xFF800000> : vector<1x256xf32>
    %4 = vector.multi_reduction <maximumf>, %0, %cst_3 [1] : vector<1x4x256xf32> to vector<1x256xf32>
    %5 = arith.truncf %3 : vector<1x256xf32> to vector<1x256xbf16>
    %c0_4 = arith.constant 0 : index
    %c0_5 = arith.constant 0 : index
    %6 = vector.load %arg2[%c0_4, %c0_5] : memref<256x256xbf16, #tpu.memory_space<vmem>>, vector<256x256xbf16>
    %cst_6 = arith.constant dense<0.000000e+00> : vector<1x256xf32>
    %7 = tpu.matmul %5, %6, %cst_6 {dimension_numbers = #tpu.dot_dimension_numbers<[1], [0], [0], [1], [0, 0, 1, 1], [], []>} : vector<1x256xbf16>, vector<256x256xbf16>, vector<1x256xf32> -> vector<1x256xf32>
    %8 = arith.truncf %4 : vector<1x256xf32> to vector<1x256xbf16>
    %c0_7 = arith.constant 0 : index
    %c0_8 = arith.constant 0 : index
    %9 = vector.load %arg3[%c0_7, %c0_8] : memref<256x256xbf16, #tpu.memory_space<vmem>>, vector<256x256xbf16>
    %cst_9 = arith.constant dense<0.000000e+00> : vector<1x256xf32>
    %10 = tpu.matmul %8, %9, %cst_9 {dimension_numbers = #tpu.dot_dimension_numbers<[1], [0], [0], [1], [0, 0, 1, 1], [], []>} : vector<1x256xbf16>, vector<256x256xbf16>, vector<1x256xf32> -> vector<1x256xf32>
    %11 = arith.addf %7, %10 : vector<1x256xf32>
    %12 = arith.negf %11 : vector<1x256xf32>
    %13 = math.exp %12 : vector<1x256xf32>
    %cst_10 = arith.constant 1.000000e+00 : f32
    %14 = vector.broadcast %cst_10 : f32 to vector<1x256xf32>
    %15 = arith.addf %14, %13 : vector<1x256xf32>
    %16 = arith.divf %14, %15 : vector<1x256xf32>
    %c0_11 = arith.constant 0 : index
    %c0_12 = arith.constant 0 : index
    %c0_13 = arith.constant 0 : index
    %17 = vector.load %arg1[%c0_11, %c0_12, %c0_13] : memref<1x4x256xf32, #tpu.memory_space<vmem>>, vector<1x4x256xf32>
    %18 = vector.shape_cast %16 : vector<1x256xf32> to vector<1x1x256xf32>
    %19 = vector.broadcast %18 : vector<1x1x256xf32> to vector<1x4x256xf32>
    %20 = arith.mulf %17, %19 : vector<1x4x256xf32>
    %c0_14 = arith.constant 0 : index
    %c0_15 = arith.constant 0 : index
    %c0_16 = arith.constant 0 : index
    %21 = vector.load %arg4[%c0_14, %c0_15, %c0_16] : memref<1x4x256xf32, #tpu.memory_space<vmem>>, vector<1x4x256xf32>
    tpu.vector_store %arg4[%c0_14, %c0_15, %c0_16], %20 {strides = array<i32>} : memref<1x4x256xf32, #tpu.memory_space<vmem>>, vector<1x4x256xf32>,
    return
  }
  func.func @transform_0(%arg0: i32) -> (i32, i32, i32) {
    %c0_i32 = arith.constant 0 : i32
    %c0_i32_0 = arith.constant 0 : i32
    %c0_i32_1 = arith.constant 0 : i32
    return %arg0, %c0_i32, %c0_i32_0 : i32, i32, i32
  }
  func.func @transform_1(%arg0: i32) -> (i32, i32) {
    %c0_i32 = arith.constant 0 : i32
    %c0_i32_0 = arith.constant 0 : i32
    %c0_i32_1 = arith.constant 0 : i32
    return %c0_i32, %c0_i32_0 : i32, i32
  }
  func.func @transform_2(%arg0: i32) -> (i32, i32) {
    %c0_i32 = arith.constant 0 : i32
    %c0_i32_0 = arith.constant 0 : i32
    %c0_i32_1 = arith.constant 0 : i32
    return %c0_i32, %c0_i32_0 : i32, i32
  }
  func.func @transform_3(%arg0: i32) -> (i32, i32, i32) {
    %c0_i32 = arith.constant 0 : i32
    %c0_i32_0 = arith.constant 0 : i32
    %c0_i32_1 = arith.constant 0 : i32
    return %arg0, %c0_i32, %c0_i32_0 : i32, i32, i32
  }
}

</mosaic_0001>

<bundles_post_ra>
// kernel: _spatial_attention.1
= control target key start
LH: loop header
LB: loop body
LE: loop exit
PB: predicated region body
PF: predicated region fallthrough
CT: control target
= control target key end

     0   :  { %s1198_s12 = smov 0   ;;  %s1620_s0 = inlined_call_operand.vmem [shape: f32[2,4,256], index: 0, kind: input, shape index: {}]   ;;  %s1621_s1 = inlined_call_operand.vmem [shape: bf16[256,256], index: 1, kind: input, shape index: {}]   ;;  %s1622_s2 = inlined_call_operand.vmem [shape: bf16[256,256], index: 2, kind: input, shape index: {}]   ;;  %s1623_s3 = inlined_call_operand.vmem [shape: f32[2,4,256], index: 3, kind: output, shape index: {}]  }
   0x1 LB: > { %s815_s13 = sadd.s32 4294967295, %s1175_s12   ;;  %p819_p0 = scmp.ge.s32.totalorder %s1175_s12, 1  ;;  %s1175_s12 = sphi %s1198_s12, %s13_s12  }
   0x2   : > { %p137_p1 = scmp.lt.s32.totalorder %s1175_s12, 3 }
   0x4   : > { %p138_p2 = pnand %p819_p0, %p137_p1 }
   0x5   : > { %p161_p3 = scmp.lt.s32.totalorder (!%p138_p2), %s815_s13, 1 }
   0x6   : > { %141 = sbr.rel (%p138_p2) target bundleno = 258 (0x102), region = 32 }
   0xb   : > { %v882_v0 = vld [vmem:[%s1622_s2 + $0x70] sm:$0xf]  ;;  %v1133_v1 = vld [vmem:[%s1622_s2 + $0x74] sm:$0xf0]  ;;  %v1132_v2 = vld [vmem:[%s1622_s2 + $0x74] sm:$0xf] }
   0xc   : > { %v883_v3 = vor.u32 %v1133_v1, %v882_v0  ;;  %v884_v4 = vld [vmem:[%s1622_s2 + $0x78] sm:$0xf0]  ;;  %v1148_v5 = vld [vmem:[%s1622_s2 + $0xf4] sm:$0xf]  ;;  %v946_v9 = vld [vmem:[%s1622_s2 + $0xf0] sm:$0xf] }
   0xd   : > { %v948_v6 = vld [vmem:[%s1622_s2 + $0xf8] sm:$0xf0]  ;;  %v887_v7 = vor.u32 %v1132_v2, %v884_v4  ;;  %v1149_v10 = vld [vmem:[%s1622_s2 + $0xf4] sm:$0xf0]  ;;  %v874_v11 = vld [vmem:[%s1622_s2 + $0x60] sm:$0xf] }
   0xe   : > { %v951_v8 = vor.u32 %v1148_v5, %v948_v6  ;;  %449 = vmatpush.bf16.msra.mxu0 %v883_v3  ;;  %v947_v12 = vor.u32 %v1149_v10, %v946_v9  ;;  %v1131_v13 = vld [vmem:[%s1622_s2 + $0x64] sm:$0xf0]  ;;  %v1130_v14 = vld [vmem:[%s1622_s2 + $0x64] sm:$0xf]  ;;  %v876_v15 = vld [vmem:[%s1622_s2 + $0x68] sm:$0xf0] }
   0xf   : > { %475 = vmatpush.bf16.msra.mxu2 %v887_v7  ;;  %v875_v16 = vor.u32 %v1131_v13, %v874_v11  ;;  %v879_v17 = vor.u32 %v1130_v14, %v876_v15  ;;  %v1146_v18 = vld [vmem:[%s1622_s2 + $0xe4] sm:$0xf]  ;;  %v940_v19 = vld [vmem:[%s1622_s2 + $0xe8] sm:$0xf0]  ;;  %v938_v20 = vld [vmem:[%s1622_s2 + $0xe0] sm:$0xf] }
  0x10   : > { %488 = vmatpush.bf16.msra.mxu3 %v951_v8  ;;  %462 = vmatpush.bf16.msra.mxu1 %v947_v12  ;;  %v943_v21 = vor.u32 %v1146_v18, %v940_v19  ;;  %v1147_v22 = vld [vmem:[%s1622_s2 + $0xe4] sm:$0xf0]  ;;  %v866_v23 = vld [vmem:[%s1622_s2 + $0x50] sm:$0xf]  ;;  %v1129_v24 = vld [vmem:[%s1622_s2 + $0x54] sm:$0xf0] }
  0x11   : > { %v939_v25 = vor.u32 %v1147_v22, %v938_v20  ;;  %v1128_v26 = vld [vmem:[%s1622_s2 + $0x54] sm:$0xf]  ;;  %v868_v27 = vld [vmem:[%s1622_s2 + $0x58] sm:$0xf0]  ;;  %v867_v29 = vor.u32 %v1129_v24, %v866_v23  ;;  %v930_v31 = vld [vmem:[%s1622_s2 + $0xd0] sm:$0xf] }
  0x12   : > { %v1144_v28 = vld [vmem:[%s1622_s2 + $0xd4] sm:$0xf]  ;;  %450 = vmatpush.bf16.msra.mxu0 %v875_v16  ;;  %v932_v30 = vld [vmem:[%s1622_s2 + $0xd8] sm:$0xf0]  ;;  %v1145_v32 = vld [vmem:[%s1622_s2 + $0xd4] sm:$0xf0]  ;;  %v871_v33 = vor.u32 %v1128_v26, %v868_v27 }
  0x13   : > { %476 = vmatpush.bf16.msra.mxu2 %v879_v17  ;;  %v935_v34 = vor.u32 %v1144_v28, %v932_v30  ;;  %v858_v35 = vld [vmem:[%s1622_s2 + $0x40] sm:$0xf]  ;;  %v1127_v36 = vld [vmem:[%s1622_s2 + $0x44] sm:$0xf0]  ;;  %v1126_v37 = vld [vmem:[%s1622_s2 + $0x44] sm:$0xf]  ;;  %v931_v38 = vor.u32 %v1145_v32, %v930_v31 }
  0x14   : > { %489 = vmatpush.bf16.msra.mxu3 %v943_v21  ;;  %463 = vmatpush.bf16.msra.mxu1 %v939_v25  ;;  %v860_v39 = vld [vmem:[%s1622_s2 + $0x48] sm:$0xf0]  ;;  %v1142_v40 = vld [vmem:[%s1622_s2 + $0xc4] sm:$0xf]  ;;  %v922_v42 = vld [vmem:[%s1622_s2 + $0xc0] sm:$0xf]  ;;  %v859_v44 = vor.u32 %v1127_v36, %v858_v35 }
  0x15   : > { %v924_v41 = vld [vmem:[%s1622_s2 + $0xc8] sm:$0xf0]  ;;  %v1143_v43 = vld [vmem:[%s1622_s2 + $0xc4] sm:$0xf0]  ;;  %v863_v45 = vor.u32 %v1126_v37, %v860_v39  ;;  %v850_v47 = vld [vmem:[%s1622_s2 + $0x30] sm:$0xf] }
  0x16   : > { %451 = vmatpush.bf16.msra.mxu0 %v867_v29  ;;  %v927_v46 = vor.u32 %v1142_v40, %v924_v41  ;;  %v1125_v48 = vld [vmem:[%s1622_s2 + $0x34] sm:$0xf0]  ;;  %v1124_v49 = vld [vmem:[%s1622_s2 + $0x34] sm:$0xf]  ;;  %v923_v50 = vor.u32 %v1143_v43, %v922_v42  ;;  %v852_v51 = vld [vmem:[%s1622_s2 + $0x38] sm:$0xf0] }
  0x17   : > { %477 = vmatpush.bf16.msra.mxu2 %v871_v33  ;;  %v1140_v52 = vld [vmem:[%s1622_s2 + $0xb4] sm:$0xf]  ;;  %v916_v53 = vld [vmem:[%s1622_s2 + $0xb8] sm:$0xf0]  ;;  %v914_v54 = vld [vmem:[%s1622_s2 + $0xb0] sm:$0xf]  ;;  %v851_v56 = vor.u32 %v1125_v48, %v850_v47  ;;  %v855_v57 = vor.u32 %v1124_v49, %v852_v51 }
  0x18   : > { %490 = vmatpush.bf16.msra.mxu3 %v935_v34  ;;  %464 = vmatpush.bf16.msra.mxu1 %v931_v38  ;;  %v1141_v55 = vld [vmem:[%s1622_s2 + $0xb4] sm:$0xf0]  ;;  %v919_v58 = vor.u32 %v1140_v52, %v916_v53  ;;  %v842_v59 = vld [vmem:[%s1622_s2 + $0x20] sm:$0xf]  ;;  %v1123_v60 = vld [vmem:[%s1622_s2 + $0x24] sm:$0xf0] }
  0x19   : > { %v1122_v61 = vld [vmem:[%s1622_s2 + $0x24] sm:$0xf]  ;;  %v915_v62 = vor.u32 %v1141_v55, %v914_v54  ;;  %v844_v63 = vld [vmem:[%s1622_s2 + $0x28] sm:$0xf0]  ;;  %v906_v2 = vld [vmem:[%s1622_s2 + $0xa0] sm:$0xf]  ;;  %v843_v4 = vor.u32 %v1123_v60, %v842_v59 }
  0x1a   : > { %452 = vmatpush.bf16.msra.mxu0 %v859_v44  ;;  %v1138_v0 = vld [vmem:[%s1622_s2 + $0xa4] sm:$0xf]  ;;  %v908_v1 = vld [vmem:[%s1622_s2 + $0xa8] sm:$0xf0]  ;;  %v1139_v3 = vld [vmem:[%s1622_s2 + $0xa4] sm:$0xf0]  ;;  %v847_v5 = vor.u32 %v1122_v61, %v844_v63 }
  0x1b   : > { %478 = vmatpush.bf16.msra.mxu2 %v863_v45  ;;  %v911_v6 = vor.u32 %v1138_v0, %v908_v1  ;;  %v834_v7 = vld [vmem:[%s1622_s2 + $0x10] sm:$0xf]  ;;  %v1121_v8 = vld [vmem:[%s1622_s2 + $0x14] sm:$0xf0]  ;;  %v1120_v9 = vld [vmem:[%s1622_s2 + $0x14] sm:$0xf]  ;;  %v907_v10 = vor.u32 %v1139_v3, %v906_v2 }
  0x1c   : > { %491 = vmatpush.bf16.msra.mxu3 %v927_v46  ;;  %465 = vmatpush.bf16.msra.mxu1 %v923_v50  ;;  %v836_v11 = vld [vmem:[%s1622_s2 + $0x18] sm:$0xf0]  ;;  %v1136_v12 = vld [vmem:[%s1622_s2 + $0x94] sm:$0xf]  ;;  %v898_v14 = vld [vmem:[%s1622_s2 + $0x90] sm:$0xf]  ;;  %v835_v16 = vor.u32 %v1121_v8, %v834_v7 }
  0x1d   : > { %v900_v13 = vld [vmem:[%s1622_s2 + $0x98] sm:$0xf0]  ;;  %v1137_v15 = vld [vmem:[%s1622_s2 + $0x94] sm:$0xf0]  ;;  %v826_v17 = vld [vmem:[%s1622_s2] sm:$0xf]  ;;  %v839_v20 = vor.u32 %v1120_v9, %v836_v11 }
  0x1e   : > { %453 = vmatpush.bf16.msra.mxu0 %v851_v56  ;;  %v1119_v18 = vld [vmem:[%s1622_s2 + $0x4] sm:$0xf0]  ;;  %v1118_v19 = vld [vmem:[%s1622_s2 + $0x4] sm:$0xf]  ;;  %v903_v21 = vor.u32 %v1136_v12, %v900_v13  ;;  %v828_v22 = vld [vmem:[%s1622_s2 + $0x8] sm:$0xf0]  ;;  %v899_v25 = vor.u32 %v1137_v15, %v898_v14 }
  0x1f   : > { %479 = vmatpush.bf16.msra.mxu2 %v855_v57  ;;  %v1134_v23 = vld [vmem:[%s1622_s2 + $0x84] sm:$0xf]  ;;  %v892_v24 = vld [vmem:[%s1622_s2 + $0x88] sm:$0xf0]  ;;  %v1010_v26 = vld [vmem:[%s1621_s1 + $0x70] sm:$0xf]  ;;  %v827_v31 = vor.u32 %v1119_v18, %v826_v17  ;;  %v831_v35 = vor.u32 %v1118_v19, %v828_v22 }
  0x20   : > { %492 = vmatpush.bf16.msra.mxu3 %v919_v58  ;;  %466 = vmatpush.bf16.msra.mxu1 %v915_v62  ;;  %v1101_v27 = vld [vmem:[%s1621_s1 + $0x74] sm:$0xf0]  ;;  %v1100_v28 = vld [vmem:[%s1621_s1 + $0x74] sm:$0xf]  ;;  %v1012_v29 = vld [vmem:[%s1621_s1 + $0x78] sm:$0xf0]  ;;  %v895_v36 = vor.u32 %v1134_v23, %v892_v24 }
  0x21   : > { %v1116_v30 = vld [vmem:[%s1621_s1 + $0xf4] sm:$0xf]  ;;  %v1076_v32 = vld [vmem:[%s1621_s1 + $0xf8] sm:$0xf0]  ;;  %v890_v33 = vld [vmem:[%s1622_s2 + $0x80] sm:$0xf]  ;;  %v1011_v39 = vor.u32 %v1101_v27, %v1010_v26  ;;  %v1015_v40 = vor.u32 %v1100_v28, %v1012_v29 }
  0x22   : > { %454 = vmatpush.bf16.msra.mxu0 %v843_v4  ;;  %v1135_v34 = vld [vmem:[%s1622_s2 + $0x84] sm:$0xf0]  ;;  %v1074_v37 = vld [vmem:[%s1621_s1 + $0xf0] sm:$0xf]  ;;  %v1117_v38 = vld [vmem:[%s1621_s1 + $0xf4] sm:$0xf0]  ;;  %v1079_v43 = vor.u32 %v1116_v30, %v1076_v32 }
  0x23   : > { %480 = vmatpush.bf16.msra.mxu2 %v847_v5  ;;  %s1625_s13 = smov (!%p161_p3, %s815_s13), 1  ;;  %v1002_v41 = vld [vmem:[%s1621_s1 + $0x60] sm:$0xf]  ;;  %v1099_v42 = vld [vmem:[%s1621_s1 + $0x64] sm:$0xf0]  ;;  %v891_v44 = vor.u32 %v1135_v34, %v890_v33  ;;  %v1075_v47 = vor.u32 %v1117_v38, %v1074_v37  ;;  %vm178_vm0 = vcmask 1043456  }
  0x24   : > { %493 = vmatpush.bf16.msra.mxu3 %v911_v6  ;;  %467 = vmatpush.bf16.msra.mxu1 %v907_v10  ;;  %v1098_v45 = vld [vmem:[%s1621_s1 + $0x64] sm:$0xf]  ;;  %v1004_v46 = vld [vmem:[%s1621_s1 + $0x68] sm:$0xf0]  ;;  %s1084_s16 = sshll.u32 %s1625_s13, 3  ;;  %v1003_v53 = vor.u32 %v1099_v42, %v1002_v41 }
  0x25   : > { %v1114_v48 = vld [vmem:[%s1621_s1 + $0xe4] sm:$0xf]  ;;  %v1068_v49 = vld [vmem:[%s1621_s1 + $0xe8] sm:$0xf0]  ;;  %s165_s23 = scalar_lea.vmem %s1620_s0, %s1084_s16  ;;  %v1066_v50 = vld [vmem:[%s1621_s1 + $0xe0] sm:$0xf]  ;;  %v1007_v54 = vor.u32 %v1098_v45, %v1004_v46  ;;  %s170_s30 = scalar_lea.vmem %s1623_s3, %s1084_s16 }
  0x26   : > { %455 = vmatpush.bf16.msra.mxu0 %v835_v16  ;;  %v1115_v51 = vld [vmem:[%s1621_s1 + $0xe4] sm:$0xf0]  ;;  %v1458_v52 = vld [vmem:[%s165_s23] sm:$0xff]  ;;  %v994_v55 = vld [vmem:[%s1621_s1 + $0x50] sm:$0xf]  ;;  %v1071_v56 = vor.u32 %v1114_v48, %v1068_v49 }
  0x27   : > { %481 = vmatpush.bf16.msra.mxu2 %v839_v20  ;;  %173 = vst [vmem:[#allocation1] ss:$2 sm:$0xff] %v1458_v52  ;;  %v1097_v57 = vld [vmem:[%s1621_s1 + $0x54] sm:$0xf0]  ;;  %v1096_v58 = vld [vmem:[%s1621_s1 + $0x54] sm:$0xf]  ;;  %v1067_v60 = vor.u32 %v1115_v51, %v1066_v50 }
  0x28   : > { %494 = vmatpush.bf16.msra.mxu3 %v903_v21  ;;  %468 = vmatpush.bf16.msra.mxu1 %v899_v25  ;;  %v996_v59 = vld [vmem:[%s1621_s1 + $0x58] sm:$0xf0]  ;;  %v1112_v61 = vld [vmem:[%s1621_s1 + $0xd4] sm:$0xf]  ;;  %v1058_v63 = vld [vmem:[%s1621_s1 + $0xd0] sm:$0xf]  ;;  %v995_v1 = vor.u32 %v1097_v57, %v994_v55 }
  0x29   : > { %v1060_v62 = vld [vmem:[%s1621_s1 + $0xd8] sm:$0xf0]  ;;  %v1113_v0 = vld [vmem:[%s1621_s1 + $0xd4] sm:$0xf0]  ;;  %v999_v2 = vor.u32 %v1096_v58, %v996_v59  ;;  %v986_v3 = vld [vmem:[%s1621_s1 + $0x40] sm:$0xf] }
  0x2a   : > { %456 = vmatpush.bf16.msra.mxu0 %v827_v31  ;;  %v1095_v4 = vld [vmem:[%s1621_s1 + $0x44] sm:$0xf0]  ;;  %v1063_v5 = vor.u32 %v1112_v61, %v1060_v62  ;;  %v1094_v6 = vld [vmem:[%s1621_s1 + $0x44] sm:$0xf]  ;;  %v988_v7 = vld [vmem:[%s1621_s1 + $0x48] sm:$0xf0]  ;;  %v1059_v9 = vor.u32 %v1113_v0, %v1058_v63 }
  0x2b   : > { %482 = vmatpush.bf16.msra.mxu2 %v831_v35  ;;  %v1110_v8 = vld [vmem:[%s1621_s1 + $0xc4] sm:$0xf]  ;;  %v1052_v10 = vld [vmem:[%s1621_s1 + $0xc8] sm:$0xf0]  ;;  %v1050_v11 = vld [vmem:[%s1621_s1 + $0xc0] sm:$0xf]  ;;  %v987_v15 = vor.u32 %v1095_v4, %v986_v3  ;;  %v991_v16 = vor.u32 %v1094_v6, %v988_v7 }
  0x2c   : > { %495 = vmatpush.bf16.msra.mxu3 %v895_v36  ;;  %469 = vmatpush.bf16.msra.mxu1 %v891_v44  ;;  %v1111_v12 = vld [vmem:[%s1621_s1 + $0xc4] sm:$0xf0]  ;;  %v978_v17 = vld [vmem:[%s1621_s1 + $0x30] sm:$0xf]  ;;  %v1055_v18 = vor.u32 %v1110_v8, %v1052_v10  ;;  %v1093_v19 = vld [vmem:[%s1621_s1 + $0x34] sm:$0xf0] }
  0x2d   : > { %v1092_v20 = vld [vmem:[%s1621_s1 + $0x34] sm:$0xf]  ;;  %v980_v21 = vld [vmem:[%s1621_s1 + $0x38] sm:$0xf0]  ;;  %v1051_v22 = vor.u32 %v1111_v12, %v1050_v11  ;;  %v1042_v25 = vld [vmem:[%s1621_s1 + $0xb0] sm:$0xf]  ;;  %v979_v28 = vor.u32 %v1093_v19, %v978_v17 }
  0x2e   : > { %661 = vmatpush.bf16.msrb.mxu0 %v1011_v39  ;;  %v174_v13 = vld.sshfl [vmem:[#allocation1] sm:$0xff pattern:$0x75316420]  ;;  %v175_v14 = vld.sshfl [vmem:[#allocation1 + $0x8] sm:$0xff pattern:$0x75316420]  ;;  %v983_v29 = vor.u32 %v1092_v20, %v980_v21 }
  0x2f   : > { %687 = vmatpush.bf16.msrb.mxu2 %v1015_v40  ;;  %202 = vst [vmem:[#allocation1] ss:$2 sm:$0xff] %v1458_v52  ;;  %v1108_v23 = vld [vmem:[%s1621_s1 + $0xb4] sm:$0xf]  ;;  %v1044_v24 = vld [vmem:[%s1621_s1 + $0xb8] sm:$0xf0] }
  0x30   : > { %700 = vmatpush.bf16.msrb.mxu3 %v1079_v43  ;;  %674 = vmatpush.bf16.msrb.mxu1 %v1075_v47  ;;  %v1109_v26 = vld [vmem:[%s1621_s1 + $0xb4] sm:$0xf0]  ;;  %v970_v27 = vld [vmem:[%s1621_s1 + $0x20] sm:$0xf]  ;;  %v1091_v30 = vld [vmem:[%s1621_s1 + $0x24] sm:$0xf0]  ;;  %v1047_v33 = vor.u32 %v1108_v23, %v1044_v24 }
  0x31   : > { %v1090_v31 = vld [vmem:[%s1621_s1 + $0x24] sm:$0xf]  ;;  %v972_v32 = vld [vmem:[%s1621_s1 + $0x28] sm:$0xf0]  ;;  %v1043_v35 = vor.u32 %v1109_v26, %v1042_v25  ;;  %v1034_v37 = vld [vmem:[%s1621_s1 + $0xa0] sm:$0xf]  ;;  %v971_v41 = vor.u32 %v1091_v30, %v970_v27 }
  0x32   : > { %662 = vmatpush.bf16.msrb.mxu0 %v1003_v53  ;;  %v1106_v34 = vld [vmem:[%s1621_s1 + $0xa4] sm:$0xf]  ;;  %v1036_v36 = vld [vmem:[%s1621_s1 + $0xa8] sm:$0xf0]  ;;  %v1107_v38 = vld [vmem:[%s1621_s1 + $0xa4] sm:$0xf0]  ;;  %v975_v42 = vor.u32 %v1090_v31, %v972_v32 }
  0x33   : > { %688 = vmatpush.bf16.msrb.mxu2 %v1007_v54  ;;  %v962_v43 = vld [vmem:[%s1621_s1 + $0x10] sm:$0xf]  ;;  %v1089_v44 = vld [vmem:[%s1621_s1 + $0x14] sm:$0xf0]  ;;  %v1088_v47 = vld [vmem:[%s1621_s1 + $0x14] sm:$0xf]  ;;  %v1039_v51 = vor.u32 %v1106_v34, %v1036_v36  ;;  %v1035_v55 = vor.u32 %v1107_v38, %v1034_v37 }
  0x34   : > { %701 = vmatpush.bf16.msrb.mxu3 %v1071_v56  ;;  %675 = vmatpush.bf16.msrb.mxu1 %v1067_v60  ;;  %v179_v48 = vsel %vm178_vm0, %v174_v13, 0.0  ;;  %v964_v53 = vld [vmem:[%s1621_s1 + $0x18] sm:$0xf0]  ;;  %v1104_v56 = vld [vmem:[%s1621_s1 + $0x94] sm:$0xf]  ;;  %v1177_v58 = vmov 4.0  }
  0x35   : > { %v180_v54 = vrot.slane %v179_v48, 4  ;;  %v1028_v57 = vld [vmem:[%s1621_s1 + $0x98] sm:$0xf0]  ;;  %1159 = vrcp.f32 %v1177_v58  ;;  %v186_v59 = vsel %vm178_vm0, %v175_v14, 0.0  ;;  %v1026_v62 = vld [vmem:[%s1621_s1 + $0x90] sm:$0xf]  ;;  %v967_v3 = vor.u32 %v1088_v47, %v964_v53 }
  0x36   : > { %663 = vmatpush.bf16.msrb.mxu0 %v995_v1  ;;  %v203_v39 = vld.sshfl [vmem:[#allocation1] sm:$0xff pattern:$0x75316420]  ;;  %v204_v40 = vld.sshfl [vmem:[#allocation1 + $0x8] sm:$0xff pattern:$0x75316420]  ;;  %v1031_v8 = vor.u32 %v1104_v56, %v1028_v57 }
  0x37   : > { %689 = vmatpush.bf16.msrb.mxu2 %v999_v2  ;;  %v207_v45 = vsel %vm178_vm0, %v203_v39, -inf  ;;  %v214_v46 = vsel %vm178_vm0, %v204_v40, -inf  ;;  %v1105_v63 = vld [vmem:[%s1621_s1 + $0x94] sm:$0xf0]  ;;  %v181_v0 = vadd.f32 %v180_v54, %v179_v48  ;;  %v187_v1 = vrot.slane %v186_v59, 4 }
  0x38   : > { %702 = vmatpush.bf16.msrb.mxu3 %v1063_v5  ;;  %676 = vmatpush.bf16.msrb.mxu1 %v1059_v9  ;;  %v208_v49 = vrot.slane %v207_v45, 4  ;;  %v215_v50 = vrot.slane %v214_v46, 4  ;;  %v963_v2 = vor.u32 %v1089_v44, %v962_v43  ;;  %v954_v4 = vld [vmem:[%s1621_s1] sm:$0xf]  ;;  %v1087_v5 = vld [vmem:[%s1621_s1 + $0x4] sm:$0xf0]  ;;  %v1027_v12 = vor.u32 %v1105_v63, %v1026_v62 }
  0x39   : > { %v1086_v9 = vld [vmem:[%s1621_s1 + $0x4] sm:$0xf]  ;;  %v956_v10 = vld [vmem:[%s1621_s1 + $0x8] sm:$0xf0]  ;;  %v188_v11 = vadd.f32 %v187_v1, %v186_v59  ;;  %v1103_v19 = vld [vmem:[%s1621_s1 + $0x84] sm:$0xf0] }
  0x3a   : > { %664 = vmatpush.bf16.msrb.mxu0 %v987_v15  ;;  %v209_v60 = vmax.f32 %v207_v45, %v208_v49  ;;  %v216_v61 = vmax.f32 %v214_v46, %v215_v50  ;;  %v1102_v13 = vld [vmem:[%s1621_s1 + $0x84] sm:$0xf]  ;;  %v1020_v14 = vld [vmem:[%s1621_s1 + $0x88] sm:$0xf0]  ;;  %v182_v15 = vrot.slane %v181_v0, 2  ;;  %v959_v23 = vor.u32 %v1086_v9, %v956_v10 }
  0x3b   : > { %690 = vmatpush.bf16.msrb.mxu2 %v991_v16  ;;  %v189_v20 = vrot.slane %v188_v11, 2  ;;  %v1160_v21 = vpop.eup %1159  ;;  %v1023_v26 = vor.u32 %v1102_v13, %v1020_v14 }
  0x3c   : > { %703 = vmatpush.bf16.msrb.mxu3 %v1055_v18  ;;  %677 = vmatpush.bf16.msrb.mxu1 %v1051_v22  ;;  %v210_v6 = vrot.slane %v209_v60, 2  ;;  %v217_v7 = vrot.slane %v216_v61, 2  ;;  %v1018_v18 = vld [vmem:[%s1621_s1 + $0x80] sm:$0xf]  ;;  %v955_v22 = vor.u32 %v1087_v5, %v954_v4  ;;  %v194_v27 = vmul.f32 4.0, %v1160_v21 }
  0x3d   : > { %vm198_vm1 = vweird.f32 %v1160_v21 }
  0x3e   : > { %665 = vmatpush.bf16.msrb.mxu0 %v979_v28  ;;  %v211_v16 = vmax.f32 %v209_v60, %v210_v6  ;;  %v218_v17 = vmax.f32 %v216_v61, %v217_v7  ;;  %v1019_v28 = vor.u32 %v1103_v19, %v1018_v18  ;;  %v195_v32 = vsub.f32 1.0, %v194_v27 }
  0x3f   : > { %691 = vmatpush.bf16.msrb.mxu2 %v983_v29  ;;  %v183_v29 = vadd.f32 %v182_v15, %v181_v0 }
  0x40   : > { %704 = vmatpush.bf16.msrb.mxu3 %v1047_v33  ;;  %678 = vmatpush.bf16.msrb.mxu1 %v1043_v35  ;;  %v212_v24 = vrot.slane %v211_v16, 1  ;;  %v219_v25 = vrot.slane %v218_v17, 1  ;;  %v190_v33 = vadd.f32 %v189_v20, %v188_v11  ;;  %v196_v36 = vmul.f32 %v1160_v21, %v195_v32 }
  0x41   : > { %v184_v37 = vrot.slane %v183_v29, 1 }
  0x42   : > { %666 = vmatpush.bf16.msrb.mxu0 %v971_v41  ;;  %v213_v30 = vmax.f32 %v211_v16, %v212_v24  ;;  %v220_v31 = vmax.f32 %v218_v17, %v219_v25  ;;  %v191_v38 = vrot.slane %v190_v33, 1  ;;  %v197_v39 = vadd.f32 %v1160_v21, %v196_v36 }
  0x43   : > { %692 = vmatpush.bf16.msrb.mxu2 %v975_v42  ;;  %v185_v40 = vadd.f32 %v184_v37, %v183_v29 }
  0x44   : > { %705 = vmatpush.bf16.msrb.mxu3 %v1039_v51  ;;  %679 = vmatpush.bf16.msrb.mxu1 %v1035_v55  ;;  %v255_v34 = vpack.c.bf16 %v213_v30, %v213_v30  ;;  %v256_v35 = vpack.c.bf16 %v220_v31, %v220_v31  ;;  %v192_v41 = vadd.f32 %v191_v38, %v190_v33 }
  0x45   : > { %v199_v42 = vsel %vm198_vm1, %v1160_v21, %v197_v39 }
  0x46   : > { %667 = vmatpush.bf16.msrb.mxu0 %v963_v2  ;;  %483 = vmatmul.bf16.vlgmr.msra.gmra.mxu2 %v255_v34  ;;  %v200_v43 = vmul.f32 %v199_v42, %v185_v40  ;;  %v201_v44 = vmul.f32 %v199_v42, %v192_v41 }
  0x47   : > { %693 = vmatpush.bf16.msrb.mxu2 %v967_v3  ;;  %496 = vmatmul.bf16.vlgmr.msra.gmra.mxu3 %v256_v35 }
  0x48   : > { %706 = vmatpush.bf16.msrb.mxu3 %v1031_v8  ;;  %680 = vmatpush.bf16.msrb.mxu1 %v1027_v12  ;;  %v221_v45 = vpack.c.bf16 %v200_v43, %v200_v43  ;;  %v222_v46 = vpack.c.bf16 %v201_v44, %v201_v44 }
  0x49   : > { %457 = vmatmul.bf16.vlgmr.msra.gmra.mxu0 %v255_v34  ;;  %470 = vmatmul.bf16.vlgmr.msra.gmra.mxu1 %v256_v35 }
  0x4a   : > { %668 = vmatpush.bf16.msrb.mxu0 %v955_v22 }
  0x4b   : > { %694 = vmatpush.bf16.msrb.mxu2 %v959_v23 }
  0x4c   : > { %707 = vmatpush.bf16.msrb.mxu3 %v1023_v26  ;;  %681 = vmatpush.bf16.msrb.mxu1 %v1019_v28 }
  0x56   : > { %695 = vmatmul.bf16.vlgmr.msrb.gmra.mxu2 %v221_v45 }
  0x57   : > { %708 = vmatmul.bf16.vlgmr.msrb.gmra.mxu3 %v222_v46 }
  0x59   : > { %669 = vmatmul.bf16.vlgmr.msrb.gmra.mxu0 %v221_v45  ;;  %682 = vmatmul.bf16.vlgmr.msrb.gmra.mxu1 %v222_v46 }
  0xc6   : > { %v458_v47 = vpop.f32.mrf.mxu0  ;;  %v471_v48 = vpop.f32.mrf.mxu1 }
  0xc7   : > { %v472_v56 = vadd.f32 %v471_v48, %v458_v47 }
  0xc9   : > { %v484_v49 = vpop.f32.mrf.mxu2 }
  0xca   : > { %v497_v50 = vpop.f32.mrf.mxu3 }
  0xcb   : > { %v498_v61 = vadd.f32 %v497_v50, %v484_v49 }
  0xce   : > { %v460_v51 = vpop.f32.mrf.mxu0  ;;  %v473_v53 = vpop.f32.mrf.mxu1 }
  0xd1   : > { %v486_v54 = vpop.f32.mrf.mxu2 }
  0xd2   : > { %v499_v55 = vpop.f32.mrf.mxu3 }
  0xd6   : > { %v670_v57 = vpop.f32.mrf.mxu0  ;;  %v683_v58 = vpop.f32.mrf.mxu1 }
  0xd7   : > { %v671_v59 = vadd.f32 %v670_v57, %v472_v56 }
  0xd9   : > { %v684_v60 = vadd.f32 %v683_v58, %v671_v59  ;;  %v696_v63 = vpop.f32.mrf.mxu2 }
  0xda   : > { %v709_v0 = vpop.f32.mrf.mxu3  ;;  %v697_v1 = vadd.f32 %v696_v63, %v498_v61 }
  0xdb   : > { %v1080_v62 = vmul.f32 -1.442695, %v684_v60 }
  0xdc   : > { %v710_v2 = vadd.f32 %v709_v0, %v697_v1 }
  0xdd   : > { %1161 = vpow2.f32 %v1080_v62 }
  0xde   : > { %v672_v3 = vpop.f32.mrf.mxu0  ;;  %v685_v4 = vpop.f32.mrf.mxu1  ;;  %v1081_v5 = vmul.f32 -1.442695, %v710_v2 }
  0xe0   : > { %1163 = vpow2.f32 %v1081_v5 }
  0xe1   : > { %v698_v7 = vpop.f32.mrf.mxu2 }
  0xe2   : > { %v711_v8 = vpop.f32.mrf.mxu3 }
  0xe3   : > { %v1162_v6 = vpop.eup %1161 }
  0xe4   : > { %v719_v9 = vadd.f32 1.0, %v1162_v6 }
  0xe6   : > { %1165 = vrcp.f32 %v719_v9  ;;  %v1164_v10 = vpop.eup %1163  ;;  %vm726_vm3 = vweird.f32 %v719_v9  ;;  %v732_v20 = vand.u32 2147483648, %v719_v9  ;;  %v730_v22 = vand.u32 2147483647, %v719_v9 }
  0xe7   : > { %v720_v11 = vadd.f32 1.0, %v1164_v10 }
  0xe8   : > { %v733_v27 = vor.u32 1.1754944e-38, %v732_v20  ;;  %vm731_vm8 = vcmp.eq.f32.partialorder %v730_v22, 8.507059e+37 }
  0xe9   : > { %1167 = vrcp.f32 %v720_v11  ;;  %v747_v21 = vand.u32 2147483648, %v720_v11  ;;  %v745_v24 = vand.u32 2147483647, %v720_v11  ;;  %vm741_vm6 = vweird.f32 %v720_v11 }
  0xeb   : > { %v748_v28 = vor.u32 1.1754944e-38, %v747_v21  ;;  %vm746_vm9 = vcmp.eq.f32.partialorder %v745_v24, 8.507059e+37 }
  0xec   : > { %v1166_v12 = vpop.eup %1165 }
  0xed   : > { %v722_v13 = vmul.f32 %v1166_v12, %v719_v9  ;;  %vm727_vm2 = vweird.f32 %v1166_v12 }
  0xee   : > { %vm728_vm5 = vmor %vm726_vm3, %vm727_vm2 }
  0xef   : > { %v723_v14 = vsub.f32 1.0, %v722_v13  ;;  %v1168_v15 = vpop.eup %1167 }
  0xf0   : > { %v737_v17 = vmul.f32 %v1168_v15, %v720_v11  ;;  %vm742_vm4 = vweird.f32 %v1168_v15 }
  0xf1   : > { %v724_v16 = vmul.f32 %v1166_v12, %v723_v14  ;;  %vm743_vm7 = vmor %vm741_vm6, %vm742_vm4 }
  0xf2   : > { %v738_v19 = vsub.f32 1.0, %v737_v17 }
  0xf3   : > { %v725_v18 = vadd.f32 %v1166_v12, %v724_v16 }
  0xf4   : > { %v739_v23 = vmul.f32 %v1168_v15, %v738_v19 }
  0xf5   : > { %v729_v25 = vsel %vm728_vm5, %v1166_v12, %v725_v18 }
  0xf6   : > { %v740_v26 = vadd.f32 %v1168_v15, %v739_v23  ;;  %v734_v30 = vsel %vm731_vm8, %v733_v27, %v729_v25 }
  0xf7   : > { %v751_v33 = vperm.slane %v734_v30, 0 }
  0xf8   : > { %v744_v29 = vsel %vm743_vm7, %v1168_v15, %v740_v26 }
  0xf9   : > { %v749_v31 = vsel %vm746_vm9, %v748_v28, %v744_v29 }
  0xfa   : > { %v752_v32 = vperm.slane %v749_v31, 0 }
  0xfc   : > { %v755_v34 = vrot.slane %v752_v32, 4 }
  0xfe   : > { %v756_v35 = vsel %vm178_vm0, %v751_v33, %v755_v34 }
  0xff   : > { %v758_v36 = vmul.f32 %v756_v35, %v1458_v52 }
 0x101   : > { %759 = vst [vmem:[%s170_s30] sm:$0xff] %v758_v36 }
 0x102 PF: > { %s13_s12 = sadd.s32 1, %s1175_s12  }
 0x103   : > { %p10_p4 = scmp.ge.s32.totalorder %s13_s12, 4  }
 0x105   :  { %12 = sbr.rel (!%p10_p4) target bundleno = 1 (0x1), region = 62 }

// kernel: _spatial_attention.1
= control target key start
LH: loop header
LB: loop body
LE: loop exit
PB: predicated region body
PF: predicated region fallthrough
CT: control target
= control target key end

     0   :  { %s1198_s12 = smov 0   ;;  %s1620_s0 = inlined_call_operand.vmem [shape: f32[2,4,256], index: 0, kind: input, shape index: {}]   ;;  %s1621_s1 = inlined_call_operand.vmem [shape: bf16[256,256], index: 1, kind: input, shape index: {}]   ;;  %s1622_s2 = inlined_call_operand.vmem [shape: bf16[256,256], index: 2, kind: input, shape index: {}]   ;;  %s1623_s3 = inlined_call_operand.vmem [shape: f32[2,4,256], index: 3, kind: output, shape index: {}]  }
   0x1 LB: > { %s815_s13 = sadd.s32 4294967295, %s1175_s12   ;;  %p819_p0 = scmp.ge.s32.totalorder %s1175_s12, 1  ;;  %s1175_s12 = sphi %s1198_s12, %s13_s12  }
   0x2   : > { %p137_p1 = scmp.lt.s32.totalorder %s1175_s12, 3 }
   0x4   : > { %p138_p2 = pnand %p819_p0, %p137_p1 }
   0x5   : > { %p161_p3 = scmp.lt.s32.totalorder (!%p138_p2), %s815_s13, 1 }
   0x6   : > { %141 = sbr.rel (%p138_p2) target bundleno = 258 (0x102), region = 32 }
   0xb   : > { %v882_v0 = vld [vmem:[%s1622_s2 + $0x70] sm:$0xf]  ;;  %v1133_v1 = vld [vmem:[%s1622_s2 + $0x74] sm:$0xf0]  ;;  %v1132_v2 = vld [vmem:[%s1622_s2 + $0x74] sm:$0xf] }
   0xc   : > { %v883_v3 = vor.u32 %v1133_v1, %v882_v0  ;;  %v884_v4 = vld [vmem:[%s1622_s2 + $0x78] sm:$0xf0]  ;;  %v1148_v5 = vld [vmem:[%s1622_s2 + $0xf4] sm:$0xf]  ;;  %v946_v9 = vld [vmem:[%s1622_s2 + $0xf0] sm:$0xf] }
   0xd   : > { %v948_v6 = vld [vmem:[%s1622_s2 + $0xf8] sm:$0xf0]  ;;  %v887_v7 = vor.u32 %v1132_v2, %v884_v4  ;;  %v1149_v10 = vld [vmem:[%s1622_s2 + $0xf4] sm:$0xf0]  ;;  %v874_v11 = vld [vmem:[%s1622_s2 + $0x60] sm:$0xf] }
   0xe   : > { %v951_v8 = vor.u32 %v1148_v5, %v948_v6  ;;  %449 = vmatpush.bf16.msra.mxu0 %v883_v3  ;;  %v947_v12 = vor.u32 %v1149_v10, %v946_v9  ;;  %v1131_v13 = vld [vmem:[%s1622_s2 + $0x64] sm:$0xf0]  ;;  %v1130_v14 = vld [vmem:[%s1622_s2 + $0x64] sm:$0xf]  ;;  %v876_v15 = vld [vmem:[%s1622_s2 + $0x68] sm:$0xf0] }
   0xf   : > { %475 = vmatpush.bf16.msra.mxu2 %v887_v7  ;;  %v875_v16 = vor.u32 %v1131_v13, %v874_v11  ;;  %v879_v17 = vor.u32 %v1130_v14, %v876_v15  ;;  %v1146_v18 = vld [vmem:[%s1622_s2 + $0xe4] sm:$0xf]  ;;  %v940_v19 = vld [vmem:[%s1622_s2 + $0xe8] sm:$0xf0]  ;;  %v938_v20 = vld [vmem:[%s1622_s2 + $0xe0] sm:$0xf] }
  0x10   : > { %488 = vmatpush.bf16.msra.mxu3 %v951_v8  ;;  %462 = vmatpush.bf16.msra.mxu1 %v947_v12  ;;  %v943_v21 = vor.u32 %v1146_v18, %v940_v19  ;;  %v1147_v22 = vld [vmem:[%s1622_s2 + $0xe4] sm:$0xf0]  ;;  %v866_v23 = vld [vmem:[%s1622_s2 + $0x50] sm:$0xf]  ;;  %v1129_v24 = vld [vmem:[%s1622_s2 + $0x54] sm:$0xf0] }
  0x11   : > { %v939_v25 = vor.u32 %v1147_v22, %v938_v20  ;;  %v1128_v26 = vld [vmem:[%s1622_s2 + $0x54] sm:$0xf]  ;;  %v868_v27 = vld [vmem:[%s1622_s2 + $0x58] sm:$0xf0]  ;;  %v867_v29 = vor.u32 %v1129_v24, %v866_v23  ;;  %v930_v31 = vld [vmem:[%s1622_s2 + $0xd0] sm:$0xf] }
  0x12   : > { %v1144_v28 = vld [vmem:[%s1622_s2 + $0xd4] sm:$0xf]  ;;  %450 = vmatpush.bf16.msra.mxu0 %v875_v16  ;;  %v932_v30 = vld [vmem:[%s1622_s2 + $0xd8] sm:$0xf0]  ;;  %v1145_v32 = vld [vmem:[%s1622_s2 + $0xd4] sm:$0xf0]  ;;  %v871_v33 = vor.u32 %v1128_v26, %v868_v27 }
  0x13   : > { %476 = vmatpush.bf16.msra.mxu2 %v879_v17  ;;  %v935_v34 = vor.u32 %v1144_v28, %v932_v30  ;;  %v858_v35 = vld [vmem:[%s1622_s2 + $0x40] sm:$0xf]  ;;  %v1127_v36 = vld [vmem:[%s1622_s2 + $0x44] sm:$0xf0]  ;;  %v1126_v37 = vld [vmem:[%s1622_s2 + $0x44] sm:$0xf]  ;;  %v931_v38 = vor.u32 %v1145_v32, %v930_v31 }
  0x14   : > { %489 = vmatpush.bf16.msra.mxu3 %v943_v21  ;;  %463 = vmatpush.bf16.msra.mxu1 %v939_v25  ;;  %v860_v39 = vld [vmem:[%s1622_s2 + $0x48] sm:$0xf0]  ;;  %v1142_v40 = vld [vmem:[%s1622_s2 + $0xc4] sm:$0xf]  ;;  %v922_v42 = vld [vmem:[%s1622_s2 + $0xc0] sm:$0xf]  ;;  %v859_v44 = vor.u32 %v1127_v36, %v858_v35 }
  0x15   : > { %v924_v41 = vld [vmem:[%s1622_s2 + $0xc8] sm:$0xf0]  ;;  %v1143_v43 = vld [vmem:[%s1622_s2 + $0xc4] sm:$0xf0]  ;;  %v863_v45 = vor.u32 %v1126_v37, %v860_v39  ;;  %v850_v47 = vld [vmem:[%s1622_s2 + $0x30] sm:$0xf] }
  0x16   : > { %451 = vmatpush.bf16.msra.mxu0 %v867_v29  ;;  %v927_v46 = vor.u32 %v1142_v40, %v924_v41  ;;  %v1125_v48 = vld [vmem:[%s1622_s2 + $0x34] sm:$0xf0]  ;;  %v1124_v49 = vld [vmem:[%s1622_s2 + $0x34] sm:$0xf]  ;;  %v923_v50 = vor.u32 %v1143_v43, %v922_v42  ;;  %v852_v51 = vld [vmem:[%s1622_s2 + $0x38] sm:$0xf0] }
  0x17   : > { %477 = vmatpush.bf16.msra.mxu2 %v871_v33  ;;  %v1140_v52 = vld [vmem:[%s1622_s2 + $0xb4] sm:$0xf]  ;;  %v916_v53 = vld [vmem:[%s1622_s2 + $0xb8] sm:$0xf0]  ;;  %v914_v54 = vld [vmem:[%s1622_s2 + $0xb0] sm:$0xf]  ;;  %v851_v56 = vor.u32 %v1125_v48, %v850_v47  ;;  %v855_v57 = vor.u32 %v1124_v49, %v852_v51 }
  0x18   : > { %490 = vmatpush.bf16.msra.mxu3 %v935_v34  ;;  %464 = vmatpush.bf16.msra.mxu1 %v931_v38  ;;  %v1141_v55 = vld [vmem:[%s1622_s2 + $0xb4] sm:$0xf0]  ;;  %v919_v58 = vor.u32 %v1140_v52, %v916_v53  ;;  %v842_v59 = vld [vmem:[%s1622_s2 + $0x20] sm:$0xf]  ;;  %v1123_v60 = vld [vmem:[%s1622_s2 + $0x24] sm:$0xf0] }
  0x19   : > { %v1122_v61 = vld [vmem:[%s1622_s2 + $0x24] sm:$0xf]  ;;  %v915_v62 = vor.u32 %v1141_v55, %v914_v54  ;;  %v844_v63 = vld [vmem:[%s1622_s2 + $0x28] sm:$0xf0]  ;;  %v906_v2 = vld [vmem:[%s1622_s2 + $0xa0] sm:$0xf]  ;;  %v843_v4 = vor.u32 %v1123_v60, %v842_v59 }
  0x1a   : > { %452 = vmatpush.bf16.msra.mxu0 %v859_v44  ;;  %v1138_v0 = vld [vmem:[%s1622_s2 + $0xa4] sm:$0xf]  ;;  %v908_v1 = vld [vmem:[%s1622_s2 + $0xa8] sm:$0xf0]  ;;  %v1139_v3 = vld [vmem:[%s1622_s2 + $0xa4] sm:$0xf0]  ;;  %v847_v5 = vor.u32 %v1122_v61, %v844_v63 }
  0x1b   : > { %478 = vmatpush.bf16.msra.mxu2 %v863_v45  ;;  %v911_v6 = vor.u32 %v1138_v0, %v908_v1  ;;  %v834_v7 = vld [vmem:[%s1622_s2 + $0x10] sm:$0xf]  ;;  %v1121_v8 = vld [vmem:[%s1622_s2 + $0x14] sm:$0xf0]  ;;  %v1120_v9 = vld [vmem:[%s1622_s2 + $0x14] sm:$0xf]  ;;  %v907_v10 = vor.u32 %v1139_v3, %v906_v2 }
  0x1c   : > { %491 = vmatpush.bf16.msra.mxu3 %v927_v46  ;;  %465 = vmatpush.bf16.msra.mxu1 %v923_v50  ;;  %v836_v11 = vld [vmem:[%s1622_s2 + $0x18] sm:$0xf0]  ;;  %v1136_v12 = vld [vmem:[%s1622_s2 + $0x94] sm:$0xf]  ;;  %v898_v14 = vld [vmem:[%s1622_s2 + $0x90] sm:$0xf]  ;;  %v835_v16 = vor.u32 %v1121_v8, %v834_v7 }
  0x1d   : > { %v900_v13 = vld [vmem:[%s1622_s2 + $0x98] sm:$0xf0]  ;;  %v1137_v15 = vld [vmem:[%s1622_s2 + $0x94] sm:$0xf0]  ;;  %v826_v17 = vld [vmem:[%s1622_s2] sm:$0xf]  ;;  %v839_v20 = vor.u32 %v1120_v9, %v836_v11 }
  0x1e   : > { %453 = vmatpush.bf16.msra.mxu0 %v851_v56  ;;  %v1119_v18 = vld [vmem:[%s1622_s2 + $0x4] sm:$0xf0]  ;;  %v1118_v19 = vld [vmem:[%s1622_s2 + $0x4] sm:$0xf]  ;;  %v903_v21 = vor.u32 %v1136_v12, %v900_v13  ;;  %v828_v22 = vld [vmem:[%s1622_s2 + $0x8] sm:$0xf0]  ;;  %v899_v25 = vor.u32 %v1137_v15, %v898_v14 }
  0x1f   : > { %479 = vmatpush.bf16.msra.mxu2 %v855_v57  ;;  %v1134_v23 = vld [vmem:[%s1622_s2 + $0x84] sm:$0xf]  ;;  %v892_v24 = vld [vmem:[%s1622_s2 + $0x88] sm:$0xf0]  ;;  %v1010_v26 = vld [vmem:[%s1621_s1 + $0x70] sm:$0xf]  ;;  %v827_v31 = vor.u32 %v1119_v18, %v826_v17  ;;  %v831_v35 = vor.u32 %v1118_v19, %v828_v22 }
  0x20   : > { %492 = vmatpush.bf16.msra.mxu3 %v919_v58  ;;  %466 = vmatpush.bf16.msra.mxu1 %v915_v62  ;;  %v1101_v27 = vld [vmem:[%s1621_s1 + $0x74] sm:$0xf0]  ;;  %v1100_v28 = vld [vmem:[%s1621_s1 + $0x74] sm:$0xf]  ;;  %v1012_v29 = vld [vmem:[%s1621_s1 + $0x78] sm:$0xf0]  ;;  %v895_v36 = vor.u32 %v1134_v23, %v892_v24 }
  0x21   : > { %v1116_v30 = vld [vmem:[%s1621_s1 + $0xf4] sm:$0xf]  ;;  %v1076_v32 = vld [vmem:[%s1621_s1 + $0xf8] sm:$0xf0]  ;;  %v890_v33 = vld [vmem:[%s1622_s2 + $0x80] sm:$0xf]  ;;  %v1011_v39 = vor.u32 %v1101_v27, %v1010_v26  ;;  %v1015_v40 = vor.u32 %v1100_v28, %v1012_v29 }
  0x22   : > { %454 = vmatpush.bf16.msra.mxu0 %v843_v4  ;;  %v1135_v34 = vld [vmem:[%s1622_s2 + $0x84] sm:$0xf0]  ;;  %v1074_v37 = vld [vmem:[%s1621_s1 + $0xf0] sm:$0xf]  ;;  %v1117_v38 = vld [vmem:[%s1621_s1 + $0xf4] sm:$0xf0]  ;;  %v1079_v43 = vor.u32 %v1116_v30, %v1076_v32 }
  0x23   : > { %480 = vmatpush.bf16.msra.mxu2 %v847_v5  ;;  %s1625_s13 = smov (!%p161_p3, %s815_s13), 1  ;;  %v1002_v41 = vld [vmem:[%s1621_s1 + $0x60] sm:$0xf]  ;;  %v1099_v42 = vld [vmem:[%s1621_s1 + $0x64] sm:$0xf0]  ;;  %v891_v44 = vor.u32 %v1135_v34, %v890_v33  ;;  %v1075_v47 = vor.u32 %v1117_v38, %v1074_v37  ;;  %vm178_vm0 = vcmask 1043456  }
  0x24   : > { %493 = vmatpush.bf16.msra.mxu3 %v911_v6  ;;  %467 = vmatpush.bf16.msra.mxu1 %v907_v10  ;;  %v1098_v45 = vld [vmem:[%s1621_s1 + $0x64] sm:$0xf]  ;;  %v1004_v46 = vld [vmem:[%s1621_s1 + $0x68] sm:$0xf0]  ;;  %s1084_s16 = sshll.u32 %s1625_s13, 3  ;;  %v1003_v53 = vor.u32 %v1099_v42, %v1002_v41 }
  0x25   : > { %v1114_v48 = vld [vmem:[%s1621_s1 + $0xe4] sm:$0xf]  ;;  %v1068_v49 = vld [vmem:[%s1621_s1 + $0xe8] sm:$0xf0]  ;;  %s165_s23 = scalar_lea.vmem %s1620_s0, %s1084_s16  ;;  %v1066_v50 = vld [vmem:[%s1621_s1 + $0xe0] sm:$0xf]  ;;  %v1007_v54 = vor.u32 %v1098_v45, %v1004_v46  ;;  %s170_s30 = scalar_lea.vmem %s1623_s3, %s1084_s16 }
  0x26   : > { %455 = vmatpush.bf16.msra.mxu0 %v835_v16  ;;  %v1115_v51 = vld [vmem:[%s1621_s1 + $0xe4] sm:$0xf0]  ;;  %v1458_v52 = vld [vmem:[%s165_s23] sm:$0xff]  ;;  %v994_v55 = vld [vmem:[%s1621_s1 + $0x50] sm:$0xf]  ;;  %v1071_v56 = vor.u32 %v1114_v48, %v1068_v49 }
  0x27   : > { %481 = vmatpush.bf16.msra.mxu2 %v839_v20  ;;  %173 = vst [vmem:[#allocation1] ss:$2 sm:$0xff] %v1458_v52  ;;  %v1097_v57 = vld [vmem:[%s1621_s1 + $0x54] sm:$0xf0]  ;;  %v1096_v58 = vld [vmem:[%s1621_s1 + $0x54] sm:$0xf]  ;;  %v1067_v60 = vor.u32 %v1115_v51, %v1066_v50 }
  0x28   : > { %494 = vmatpush.bf16.msra.mxu3 %v903_v21  ;;  %468 = vmatpush.bf16.msra.mxu1 %v899_v25  ;;  %v996_v59 = vld [vmem:[%s1621_s1 + $0x58] sm:$0xf0]  ;;  %v1112_v61 = vld [vmem:[%s1621_s1 + $0xd4] sm:$0xf]  ;;  %v1058_v63 = vld [vmem:[%s1621_s1 + $0xd0] sm:$0xf]  ;;  %v995_v1 = vor.u32 %v1097_v57, %v994_v55 }
  0x29   : > { %v1060_v62 = vld [vmem:[%s1621_s1 + $0xd8] sm:$0xf0]  ;;  %v1113_v0 = vld [vmem:[%s1621_s1 + $0xd4] sm:$0xf0]  ;;  %v999_v2 = vor.u32 %v1096_v58, %v996_v59  ;;  %v986_v3 = vld [vmem:[%s1621_s1 + $0x40] sm:$0xf] }
  0x2a   : > { %456 = vmatpush.bf16.msra.mxu0 %v827_v31  ;;  %v1095_v4 = vld [vmem:[%s1621_s1 + $0x44] sm:$0xf0]  ;;  %v1063_v5 = vor.u32 %v1112_v61, %v1060_v62  ;;  %v1094_v6 = vld [vmem:[%s1621_s1 + $0x44] sm:$0xf]  ;;  %v988_v7 = vld [vmem:[%s1621_s1 + $0x48] sm:$0xf0]  ;;  %v1059_v9 = vor.u32 %v1113_v0, %v1058_v63 }
  0x2b   : > { %482 = vmatpush.bf16.msra.mxu2 %v831_v35  ;;  %v1110_v8 = vld [vmem:[%s1621_s1 + $0xc4] sm:$0xf]  ;;  %v1052_v10 = vld [vmem:[%s1621_s1 + $0xc8] sm:$0xf0]  ;;  %v1050_v11 = vld [vmem:[%s1621_s1 + $0xc0] sm:$0xf]  ;;  %v987_v15 = vor.u32 %v1095_v4, %v986_v3  ;;  %v991_v16 = vor.u32 %v1094_v6, %v988_v7 }
  0x2c   : > { %495 = vmatpush.bf16.msra.mxu3 %v895_v36  ;;  %469 = vmatpush.bf16.msra.mxu1 %v891_v44  ;;  %v1111_v12 = vld [vmem:[%s1621_s1 + $0xc4] sm:$0xf0]  ;;  %v978_v17 = vld [vmem:[%s1621_s1 + $0x30] sm:$0xf]  ;;  %v1055_v18 = vor.u32 %v1110_v8, %v1052_v10  ;;  %v1093_v19 = vld [vmem:[%s1621_s1 + $0x34] sm:$0xf0] }
  0x2d   : > { %v1092_v20 = vld [vmem:[%s1621_s1 + $0x34] sm:$0xf]  ;;  %v980_v21 = vld [vmem:[%s1621_s1 + $0x38] sm:$0xf0]  ;;  %v1051_v22 = vor.u32 %v1111_v12, %v1050_v11  ;;  %v1042_v25 = vld [vmem:[%s1621_s1 + $0xb0] sm:$0xf]  ;;  %v979_v28 = vor.u32 %v1093_v19, %v978_v17 }
  0x2e   : > { %661 = vmatpush.bf16.msrb.mxu0 %v1011_v39  ;;  %v174_v13 = vld.sshfl [vmem:[#allocation1] sm:$0xff pattern:$0x75316420]  ;;  %v175_v14 = vld.sshfl [vmem:[#allocation1 + $0x8] sm:$0xff pattern:$0x75316420]  ;;  %v983_v29 = vor.u32 %v1092_v20, %v980_v21 }
  0x2f   : > { %687 = vmatpush.bf16.msrb.mxu2 %v1015_v40  ;;  %202 = vst [vmem:[#allocation1] ss:$2 sm:$0xff] %v1458_v52  ;;  %v1108_v23 = vld [vmem:[%s1621_s1 + $0xb4] sm:$0xf]  ;;  %v1044_v24 = vld [vmem:[%s1621_s1 + $0xb8] sm:$0xf0] }
  0x30   : > { %700 = vmatpush.bf16.msrb.mxu3 %v1079_v43  ;;  %674 = vmatpush.bf16.msrb.mxu1 %v1075_v47  ;;  %v1109_v26 = vld [vmem:[%s1621_s1 + $0xb4] sm:$0xf0]  ;;  %v970_v27 = vld [vmem:[%s1621_s1 + $0x20] sm:$0xf]  ;;  %v1091_v30 = vld [vmem:[%s1621_s1 + $0x24] sm:$0xf0]  ;;  %v1047_v33 = vor.u32 %v1108_v23, %v1044_v24 }
  0x31   : > { %v1090_v31 = vld [vmem:[%s1621_s1 + $0x24] sm:$0xf]  ;;  %v972_v32 = vld [vmem:[%s1621_s1 + $0x28] sm:$0xf0]  ;;  %v1043_v35 = vor.u32 %v1109_v26, %v1042_v25  ;;  %v1034_v37 = vld [vmem:[%s1621_s1 + $0xa0] sm:$0xf]  ;;  %v971_v41 = vor.u32 %v1091_v30, %v970_v27 }
  0x32   : > { %662 = vmatpush.bf16.msrb.mxu0 %v1003_v53  ;;  %v1106_v34 = vld [vmem:[%s1621_s1 + $0xa4] sm:$0xf]  ;;  %v1036_v36 = vld [vmem:[%s1621_s1 + $0xa8] sm:$0xf0]  ;;  %v1107_v38 = vld [vmem:[%s1621_s1 + $0xa4] sm:$0xf0]  ;;  %v975_v42 = vor.u32 %v1090_v31, %v972_v32 }
  0x33   : > { %688 = vmatpush.bf16.msrb.mxu2 %v1007_v54  ;;  %v962_v43 = vld [vmem:[%s1621_s1 + $0x10] sm:$0xf]  ;;  %v1089_v44 = vld [vmem:[%s1621_s1 + $0x14] sm:$0xf0]  ;;  %v1088_v47 = vld [vmem:[%s1621_s1 + $0x14] sm:$0xf]  ;;  %v1039_v51 = vor.u32 %v1106_v34, %v1036_v36  ;;  %v1035_v55 = vor.u32 %v1107_v38, %v1034_v37 }
  0x34   : > { %701 = vmatpush.bf16.msrb.mxu3 %v1071_v56  ;;  %675 = vmatpush.bf16.msrb.mxu1 %v1067_v60  ;;  %v179_v48 = vsel %vm178_vm0, %v174_v13, 0.0  ;;  %v964_v53 = vld [vmem:[%s1621_s1 + $0x18] sm:$0xf0]  ;;  %v1104_v56 = vld [vmem:[%s1621_s1 + $0x94] sm:$0xf]  ;;  %v1177_v58 = vmov 4.0  }
  0x35   : > { %v180_v54 = vrot.slane %v179_v48, 4  ;;  %v1028_v57 = vld [vmem:[%s1621_s1 + $0x98] sm:$0xf0]  ;;  %1159 = vrcp.f32 %v1177_v58  ;;  %v186_v59 = vsel %vm178_vm0, %v175_v14, 0.0  ;;  %v1026_v62 = vld [vmem:[%s1621_s1 + $0x90] sm:$0xf]  ;;  %v967_v3 = vor.u32 %v1088_v47, %v964_v53 }
  0x36   : > { %663 = vmatpush.bf16.msrb.mxu0 %v995_v1  ;;  %v203_v39 = vld.sshfl [vmem:[#allocation1] sm:$0xff pattern:$0x75316420]  ;;  %v204_v40 = vld.sshfl [vmem:[#allocation1 + $0x8] sm:$0xff pattern:$0x75316420]  ;;  %v1031_v8 = vor.u32 %v1104_v56, %v1028_v57 }
  0x37   : > { %689 = vmatpush.bf16.msrb.mxu2 %v999_v2  ;;  %v207_v45 = vsel %vm178_vm0, %v203_v39, -inf  ;;  %v214_v46 = vsel %vm178_vm0, %v204_v40, -inf  ;;  %v1105_v63 = vld [vmem:[%s1621_s1 + $0x94] sm:$0xf0]  ;;  %v181_v0 = vadd.f32 %v180_v54, %v179_v48  ;;  %v187_v1 = vrot.slane %v186_v59, 4 }
  0x38   : > { %702 = vmatpush.bf16.msrb.mxu3 %v1063_v5  ;;  %676 = vmatpush.bf16.msrb.mxu1 %v1059_v9  ;;  %v208_v49 = vrot.slane %v207_v45, 4  ;;  %v215_v50 = vrot.slane %v214_v46, 4  ;;  %v963_v2 = vor.u32 %v1089_v44, %v962_v43  ;;  %v954_v4 = vld [vmem:[%s1621_s1] sm:$0xf]  ;;  %v1087_v5 = vld [vmem:[%s1621_s1 + $0x4] sm:$0xf0]  ;;  %v1027_v12 = vor.u32 %v1105_v63, %v1026_v62 }
  0x39   : > { %v1086_v9 = vld [vmem:[%s1621_s1 + $0x4] sm:$0xf]  ;;  %v956_v10 = vld [vmem:[%s1621_s1 + $0x8] sm:$0xf0]  ;;  %v188_v11 = vadd.f32 %v187_v1, %v186_v59  ;;  %v1103_v19 = vld [vmem:[%s1621_s1 + $0x84] sm:$0xf0] }
  0x3a   : > { %664 = vmatpush.bf16.msrb.mxu0 %v987_v15  ;;  %v209_v60 = vmax.f32 %v207_v45, %v208_v49  ;;  %v216_v61 = vmax.f32 %v214_v46, %v215_v50  ;;  %v1102_v13 = vld [vmem:[%s1621_s1 + $0x84] sm:$0xf]  ;;  %v1020_v14 = vld [vmem:[%s1621_s1 + $0x88] sm:$0xf0]  ;;  %v182_v15 = vrot.slane %v181_v0, 2  ;;  %v959_v23 = vor.u32 %v1086_v9, %v956_v10 }
  0x3b   : > { %690 = vmatpush.bf16.msrb.mxu2 %v991_v16  ;;  %v189_v20 = vrot.slane %v188_v11, 2  ;;  %v1160_v21 = vpop.eup %1159  ;;  %v1023_v26 = vor.u32 %v1102_v13, %v1020_v14 }
  0x3c   : > { %703 = vmatpush.bf16.msrb.mxu3 %v1055_v18  ;;  %677 = vmatpush.bf16.msrb.mxu1 %v1051_v22  ;;  %v210_v6 = vrot.slane %v209_v60, 2  ;;  %v217_v7 = vrot.slane %v216_v61, 2  ;;  %v1018_v18 = vld [vmem:[%s1621_s1 + $0x80] sm:$0xf]  ;;  %v955_v22 = vor.u32 %v1087_v5, %v954_v4  ;;  %v194_v27 = vmul.f32 4.0, %v1160_v21 }
  0x3d   : > { %vm198_vm1 = vweird.f32 %v1160_v21 }
  0x3e   : > { %665 = vmatpush.bf16.msrb.mxu0 %v979_v28  ;;  %v211_v16 = vmax.f32 %v209_v60, %v210_v6  ;;  %v218_v17 = vmax.f32 %v216_v61, %v217_v7  ;;  %v1019_v28 = vor.u32 %v1103_v19, %v1018_v18  ;;  %v195_v32 = vsub.f32 1.0, %v194_v27 }
  0x3f   : > { %691 = vmatpush.bf16.msrb.mxu2 %v983_v29  ;;  %v183_v29 = vadd.f32 %v182_v15, %v181_v0 }
  0x40   : > { %704 = vmatpush.bf16.msrb.mxu3 %v1047_v33  ;;  %678 = vmatpush.bf16.msrb.mxu1 %v1043_v35  ;;  %v212_v24 = vrot.slane %v211_v16, 1  ;;  %v219_v25 = vrot.slane %v218_v17, 1  ;;  %v190_v33 = vadd.f32 %v189_v20, %v188_v11  ;;  %v196_v36 = vmul.f32 %v1160_v21, %v195_v32 }
  0x41   : > { %v184_v37 = vrot.slane %v183_v29, 1 }
  0x42   : > { %666 = vmatpush.bf16.msrb.mxu0 %v971_v41  ;;  %v213_v30 = vmax.f32 %v211_v16, %v212_v24  ;;  %v220_v31 = vmax.f32 %v218_v17, %v219_v25  ;;  %v191_v38 = vrot.slane %v190_v33, 1  ;;  %v197_v39 = vadd.f32 %v1160_v21, %v196_v36 }
  0x43   : > { %692 = vmatpush.bf16.msrb.mxu2 %v975_v42  ;;  %v185_v40 = vadd.f32 %v184_v37, %v183_v29 }
  0x44   : > { %705 = vmatpush.bf16.msrb.mxu3 %v1039_v51  ;;  %679 = vmatpush.bf16.msrb.mxu1 %v1035_v55  ;;  %v255_v34 = vpack.c.bf16 %v213_v30, %v213_v30  ;;  %v256_v35 = vpack.c.bf16 %v220_v31, %v220_v31  ;;  %v192_v41 = vadd.f32 %v191_v38, %v190_v33 }
  0x45   : > { %v199_v42 = vsel %vm198_vm1, %v1160_v21, %v197_v39 }
  0x46   : > { %667 = vmatpush.bf16.msrb.mxu0 %v963_v2  ;;  %483 = vmatmul.bf16.vlgmr.msra.gmra.mxu2 %v255_v34  ;;  %v200_v43 = vmul.f32 %v199_v42, %v185_v40  ;;  %v201_v44 = vmul.f32 %v199_v42, %v192_v41 }
  0x47   : > { %693 = vmatpush.bf16.msrb.mxu2 %v967_v3  ;;  %496 = vmatmul.bf16.vlgmr.msra.gmra.mxu3 %v256_v35 }
  0x48   : > { %706 = vmatpush.bf16.msrb.mxu3 %v1031_v8  ;;  %680 = vmatpush.bf16.msrb.mxu1 %v1027_v12  ;;  %v221_v45 = vpack.c.bf16 %v200_v43, %v200_v43  ;;  %v222_v46 = vpack.c.bf16 %v201_v44, %v201_v44 }
  0x49   : > { %457 = vmatmul.bf16.vlgmr.msra.gmra.mxu0 %v255_v34  ;;  %470 = vmatmul.bf16.vlgmr.msra.gmra.mxu1 %v256_v35 }
  0x4a   : > { %668 = vmatpush.bf16.msrb.mxu0 %v955_v22 }
  0x4b   : > { %694 = vmatpush.bf16.msrb.mxu2 %v959_v23 }
  0x4c   : > { %707 = vmatpush.bf16.msrb.mxu3 %v1023_v26  ;;  %681 = vmatpush.bf16.msrb.mxu1 %v1019_v28 }
  0x56   : > { %695 = vmatmul.bf16.vlgmr.msrb.gmra.mxu2 %v221_v45 }
  0x57   : > { %708 = vmatmul.bf16.vlgmr.msrb.gmra.mxu3 %v222_v46 }
  0x59   : > { %669 = vmatmul.bf16.vlgmr.msrb.gmra.mxu0 %v221_v45  ;;  %682 = vmatmul.bf16.vlgmr.msrb.gmra.mxu1 %v222_v46 }
  0xc6   : > { %v458_v47 = vpop.f32.mrf.mxu0  ;;  %v471_v48 = vpop.f32.mrf.mxu1 }
  0xc7   : > { %v472_v56 = vadd.f32 %v471_v48, %v458_v47 }
  0xc9   : > { %v484_v49 = vpop.f32.mrf.mxu2 }
  0xca   : > { %v497_v50 = vpop.f32.mrf.mxu3 }
  0xcb   : > { %v498_v61 = vadd.f32 %v497_v50, %v484_v49 }
  0xce   : > { %v460_v51 = vpop.f32.mrf.mxu0  ;;  %v473_v53 = vpop.f32.mrf.mxu1 }
  0xd1   : > { %v486_v54 = vpop.f32.mrf.mxu2 }
  0xd2   : > { %v499_v55 = vpop.f32.mrf.mxu3 }
  0xd6   : > { %v670_v57 = vpop.f32.mrf.mxu0  ;;  %v683_v58 = vpop.f32.mrf.mxu1 }
  0xd7   : > { %v671_v59 = vadd.f32 %v670_v57, %v472_v56 }
  0xd9   : > { %v684_v60 = vadd.f32 %v683_v58, %v671_v59  ;;  %v696_v63 = vpop.f32.mrf.mxu2 }
  0xda   : > { %v709_v0 = vpop.f32.mrf.mxu3  ;;  %v697_v1 = vadd.f32 %v696_v63, %v498_v61 }
  0xdb   : > { %v1080_v62 = vmul.f32 -1.442695, %v684_v60 }
  0xdc   : > { %v710_v2 = vadd.f32 %v709_v0, %v697_v1 }
  0xdd   : > { %1161 = vpow2.f32 %v1080_v62 }
  0xde   : > { %v672_v3 = vpop.f32.mrf.mxu0  ;;  %v685_v4 = vpop.f32.mrf.mxu1  ;;  %v1081_v5 = vmul.f32 -1.442695, %v710_v2 }
  0xe0   : > { %1163 = vpow2.f32 %v1081_v5 }
  0xe1   : > { %v698_v7 = vpop.f32.mrf.mxu2 }
  0xe2   : > { %v711_v8 = vpop.f32.mrf.mxu3 }
  0xe3   : > { %v1162_v6 = vpop.eup %1161 }
  0xe4   : > { %v719_v9 = vadd.f32 1.0, %v1162_v6 }
  0xe6   : > { %1165 = vrcp.f32 %v719_v9  ;;  %v1164_v10 = vpop.eup %1163  ;;  %vm726_vm3 = vweird.f32 %v719_v9  ;;  %v732_v20 = vand.u32 2147483648, %v719_v9  ;;  %v730_v22 = vand.u32 2147483647, %v719_v9 }
  0xe7   : > { %v720_v11 = vadd.f32 1.0, %v1164_v10 }
  0xe8   : > { %v733_v27 = vor.u32 1.1754944e-38, %v732_v20  ;;  %vm731_vm8 = vcmp.eq.f32.partialorder %v730_v22, 8.507059e+37 }
  0xe9   : > { %1167 = vrcp.f32 %v720_v11  ;;  %v747_v21 = vand.u32 2147483648, %v720_v11  ;;  %v745_v24 = vand.u32 2147483647, %v720_v11  ;;  %vm741_vm6 = vweird.f32 %v720_v11 }
  0xeb   : > { %v748_v28 = vor.u32 1.1754944e-38, %v747_v21  ;;  %vm746_vm9 = vcmp.eq.f32.partialorder %v745_v24, 8.507059e+37 }
  0xec   : > { %v1166_v12 = vpop.eup %1165 }
  0xed   : > { %v722_v13 = vmul.f32 %v1166_v12, %v719_v9  ;;  %vm727_vm2 = vweird.f32 %v1166_v12 }
  0xee   : > { %vm728_vm5 = vmor %vm726_vm3, %vm727_vm2 }
  0xef   : > { %v723_v14 = vsub.f32 1.0, %v722_v13  ;;  %v1168_v15 = vpop.eup %1167 }
  0xf0   : > { %v737_v17 = vmul.f32 %v1168_v15, %v720_v11  ;;  %vm742_vm4 = vweird.f32 %v1168_v15 }
  0xf1   : > { %v724_v16 = vmul.f32 %v1166_v12, %v723_v14  ;;  %vm743_vm7 = vmor %vm741_vm6, %vm742_vm4 }
  0xf2   : > { %v738_v19 = vsub.f32 1.0, %v737_v17 }
  0xf3   : > { %v725_v18 = vadd.f32 %v1166_v12, %v724_v16 }
  0xf4   : > { %v739_v23 = vmul.f32 %v1168_v15, %v738_v19 }
  0xf5   : > { %v729_v25 = vsel %vm728_vm5, %v1166_v12, %v725_v18 }
  0xf6   : > { %v740_v26 = vadd.f32 %v1168_v15, %v739_v23  ;;  %v734_v30 = vsel %vm731_vm8, %v733_v27, %v729_v25 }
  0xf7   : > { %v751_v33 = vperm.slane %v734_v30, 0 }
  0xf8   : > { %v744_v29 = vsel %vm743_vm7, %v1168_v15, %v740_v26 }
  0xf9   : > { %v749_v31 = vsel %vm746_vm9, %v748_v28, %v744_v29 }
  0xfa   : > { %v752_v32 = vperm.slane %v749_v31, 0 }
  0xfc   : > { %v755_v34 = vrot.slane %v752_v32, 4 }
  0xfe   : > { %v756_v35 = vsel %vm178_vm0, %v751_v33, %v755_v34 }
  0xff   : > { %v758_v36 = vmul.f32 %v756_v35, %v1458_v52 }
 0x101   : > { %759 = vst [vmem:[%s170_s30] sm:$0xff] %v758_v36 }
 0x102 PF: > { %s13_s12 = sadd.s32 1, %s1175_s12  }
 0x103   : > { %p10_p4 = scmp.ge.s32.totalorder %s13_s12, 4  }
 0x105   :  { %12 = sbr.rel (!%p10_p4) target bundleno = 1 (0x1), region = 62 }

</bundles_post_ra>
